<compile_context>
chip_gen: v7x
topology: tpu7x:2x2x1
jax: 0.10.0
libtpu: 0.0.40
codegen_flags: <defaults>
</compile_context>

<pallas_src>
import jax
import jax.numpy as jnp
from jax.experimental import pallas as pl
from jax.experimental.pallas import tpu as pltpu


# ----------------------------------------------------------------------------
# Parameter / operator setup (plain-JAX glue, computed once per call shape)
# ----------------------------------------------------------------------------
def bilinear_up_matrix(n_in: int) -> jnp.ndarray:
    """[2*n_in, n_in] matrix reproducing nn.Upsample(scale_factor=2,
    mode='bilinear', align_corners=False) along one axis."""
    n_out = 2 * n_in
    j = jnp.arange(n_out)
    # PyTorch: src = max((dst + 0.5) * (1/scale) - 0.5, 0)
    src = jnp.maximum(j.astype(jnp.float32) * 0.5 - 0.25, 0.0)
    idx0 = jnp.minimum(jnp.floor(src).astype(jnp.int32), n_in - 1)
    idx1 = jnp.minimum(idx0 + 1, n_in - 1)
    lam = src - idx0.astype(jnp.float32)
    U = jnp.zeros((n_out, n_in), dtype=jnp.float32)
    U = U.at[j, idx0].add(1.0 - lam)
    U = U.at[j, idx1].add(lam)
    return U


def smooth_matrix(n: int) -> jnp.ndarray:
    """[n, n] matrix for 1D [1,2,1]/4 smoothing with replication padding.
    The 2D Smooth kernel [[1,2,1],[2,4,2],[1,2,1]]/16 is the outer product."""
    i = jnp.arange(n)
    S = jnp.zeros((n, n), dtype=jnp.float32)
    S = S.at[i, jnp.clip(i - 1, 0, n - 1)].add(0.25)
    S = S.at[i, i].add(0.5)
    S = S.at[i, jnp.clip(i + 1, 0, n - 1)].add(0.25)
    return S


def _choose_tbc(n_planes: int, w2: int) -> int:
    """Smallest divisor of n_planes whose folded lane width (d * 2W) is >= 128.
    Falls back to all planes if even that does not reach 128 lanes."""
    if w2 >= 128:
        return 1
    for d in range(1, n_planes + 1):
        if n_planes % d == 0 and d * w2 >= 128:
            return d
    return n_planes


# ----------------------------------------------------------------------------
# Pallas kernel: per grid step, TBC planes folded into lanes:
#   x block   (H,  TBC*W)   -> tmp = A @ x        (2H, TBC*W)
#   Bblk = kron(I_TBC, Bm)  -> out = tmp @ Bblk   (2H, TBC*2W)   (lane-dense)
# ----------------------------------------------------------------------------
# TODO(synk): for very large planes (H, W >> 256) A/Bm are banded (<=4 nnz per
# row); a pltpu.roll shift-and-add VPU formulation would beat the dense MXU
# form once the kernel becomes compute-bound.
def upsample_smooth_kernel(x_ref, a_ref, b_ref, o_ref):
    x = x_ref[0]                                     # (H, TBC*W)
    tmp = jnp.dot(a_ref[...], x,
                  preferred_element_type=jnp.float32)       # (2H, TBC*W)
    out = jnp.dot(tmp.astype(b_ref.dtype), b_ref[...],
                  preferred_element_type=jnp.float32)       # (2H, TBC*2W)
    o_ref[0] = out.astype(o_ref.dtype)


def upsample(x: jnp.ndarray, *, compute_dtype=jnp.float32) -> jnp.ndarray:
    """x: (B, C, H, W) -> (B, C, 2H, 2W). Matches nn.Upsample(2x bilinear,
    align_corners=False) followed by the fixed 3x3 Smooth blur."""
    B, C, H, W = x.shape
    H2, W2 = 2 * H, 2 * W
    N = B * C
    TBC = _choose_tbc(N, W2)
    G = N // TBC

    A = smooth_matrix(H2) @ bilinear_up_matrix(H)            # (2H, H)
    Bm = (smooth_matrix(W2) @ bilinear_up_matrix(W)).T       # (W, 2W)
    Bblk = jnp.kron(jnp.eye(TBC, dtype=Bm.dtype), Bm)        # (TBC*W, TBC*2W)

    # Fold TBC planes into the lane dimension: (G, H, TBC*W).
    # (For W >= 64 this is TBC == 1 and the transpose is a no-op reshape.)
    xf = (x.reshape(G, TBC, H, W)
            .transpose(0, 2, 1, 3)
            .reshape(G, H, TBC * W))

    if compute_dtype != jnp.float32:
        xf = xf.astype(compute_dtype)
        A = A.astype(compute_dtype)
        Bblk = Bblk.astype(compute_dtype)

    itemsize = 2 if compute_dtype == jnp.bfloat16 else 4
    vmem_bytes = int(1.2 * (
        2 * H * TBC * W * itemsize            # x block, double-buffered
        + 2 * H2 * TBC * W2 * 4               # out block, double-buffered
        + H2 * H * itemsize                   # A (single buffer)
        + (TBC * W) * (TBC * W2) * itemsize   # Bblk (single buffer)
        + (H2 * TBC * W + H2 * TBC * W2) * 4  # live intermediates
    ))
    cp_kwargs = {"dimension_semantics": ("parallel",)}
    if vmem_bytes > 32 * 1024 * 1024:
        cp_kwargs["vmem_limit_bytes"] = min(vmem_bytes, 128 * 1024 * 1024)

    out = pl.pallas_call(
        upsample_smooth_kernel,
        out_shape=jax.ShapeDtypeStruct((G, H2, TBC * W2), x.dtype),
        grid_spec=pltpu.PrefetchScalarGridSpec(
            num_scalar_prefetch=0,
            grid=(G,),
            in_specs=[
                pl.BlockSpec((1, H, TBC * W), lambda i: (i, 0, 0)),
                # Constants: whole-array VMEM residents, fetched once,
                # not double-buffered by the grid pipeline.
                pl.BlockSpec(memory_space=pltpu.MemorySpace.VMEM),
                pl.BlockSpec(memory_space=pltpu.MemorySpace.VMEM),
            ],
            out_specs=pl.BlockSpec((1, H2, TBC * W2), lambda i: (i, 0, 0)),
        ),
        compiler_params=pltpu.CompilerParams(**cp_kwargs),
    )(xf, A, Bblk)

    # Unfold lanes back to (B, C, 2H, 2W).
    return (out.reshape(G, H2, TBC, W2)
               .transpose(0, 2, 1, 3)
               .reshape(B, C, H2, W2))


# ----------------------------------------------------------------------------
# Pure-JAX reference (correctness check only)
# ----------------------------------------------------------------------------
def reference(x: jnp.ndarray) -> jnp.ndarray:
    B, C, H, W = x.shape

    def up1d(n_in):
        n_out = 2 * n_in
        j = jnp.arange(n_out)
        src = jnp.maximum(j.astype(jnp.float32) * 0.5 - 0.25, 0.0)
        i0 = jnp.minimum(jnp.floor(src).astype(jnp.int32), n_in - 1)
        i1 = jnp.minimum(i0 + 1, n_in - 1)
        lam = src - i0.astype(jnp.float32)
        return i0, i1, lam

    h0, h1, lh = up1d(H)
    w0, w1, lw = up1d(W)
    top = x[:, :, h0, :] * (1 - lh)[None, None, :, None] + \
          x[:, :, h1, :] * lh[None, None, :, None]
    up = top[:, :, :, w0] * (1 - lw)[None, None, None, :] + \
         top[:, :, :, w1] * lw[None, None, None, :]
    p = jnp.pad(up, ((0, 0), (0, 0), (1, 1), (1, 1)), mode="edge")
    k = jnp.array([[1., 2., 1.], [2., 4., 2.], [1., 2., 1.]]) / 16.0
    out = jnp.zeros_like(up)
    H2, W2 = 2 * H, 2 * W
    for di in range(3):
        for dj in range(3):
            out = out + k[di, dj] * p[:, :, di:di + H2, dj:dj + W2]
    return out


if __name__ == "__main__":
    key = jax.random.PRNGKey(0)
    x = jax.random.normal(key, (2, 4, 16, 16), dtype=jnp.float32)

    y = upsample(x)
    jax.block_until_ready(y)

    y_ref = reference(x)
    assert y.shape == (2, 4, 32, 32), y.shape
    assert jnp.allclose(y, y_ref, atol=1e-5, rtol=1e-5), \
        float(jnp.max(jnp.abs(y - y_ref)))

    print("KERNEL_OK")
</pallas_src>

<mosaic_0001>
module attributes {stable_mosaic.version = 11 : i64} {
  func.func @upsample_smooth_kernel(%arg0: i32, %arg1: memref<1x16x64xf32, #tpu.memory_space<vmem>>, %arg2: memref<32x16xf32, #tpu.memory_space<vmem>>, %arg3: memref<64x128xf32, #tpu.memory_space<vmem>>, %arg4: memref<1x32x128xf32, #tpu.memory_space<vmem>>) attributes {dimension_semantics = [#tpu.dimension_semantics<parallel>], iteration_bounds = array<i64: 2>, scalar_prefetch = 0 : i64, scratch_operands = 0 : i64, tpu.core_type = #tpu.core_type<tc>, window_params = [{transform_indices = @transform_0, window_bounds = array<i64: 1, 16, 64>}, {pipeline_mode = #tpu.pipeline_mode<synchronous>, transform_indices = @transform_1, window_bounds = array<i64: 32, 16>}, {pipeline_mode = #tpu.pipeline_mode<synchronous>, transform_indices = @transform_2, window_bounds = array<i64: 64, 128>}, {transform_indices = @transform_3, window_bounds = array<i64: 1, 32, 128>}]} {
    %c0 = arith.constant 0 : index
    %c0_0 = arith.constant 0 : index
    %c0_1 = arith.constant 0 : index
    %0 = vector.load %arg1[%c0, %c0_0, %c0_1] : memref<1x16x64xf32, #tpu.memory_space<vmem>>, vector<1x16x64xf32>
    %1 = vector.shape_cast %0 : vector<1x16x64xf32> to vector<16x64xf32>
    %c0_2 = arith.constant 0 : index
    %c0_3 = arith.constant 0 : index
    %2 = vector.load %arg2[%c0_2, %c0_3] : memref<32x16xf32, #tpu.memory_space<vmem>>, vector<32x16xf32>
    %cst = arith.constant dense<0.000000e+00> : vector<32x64xf32>
    %3 = tpu.matmul %2, %1, %cst {dimension_numbers = #tpu.dot_dimension_numbers<[1], [0], [0], [1], [0, 0, 1, 1], [], []>} : vector<32x16xf32>, vector<16x64xf32>, vector<32x64xf32> -> vector<32x64xf32>
    %c0_4 = arith.constant 0 : index
    %c0_5 = arith.constant 0 : index
    %4 = vector.load %arg3[%c0_4, %c0_5] : memref<64x128xf32, #tpu.memory_space<vmem>>, vector<64x128xf32>
    %cst_6 = arith.constant dense<0.000000e+00> : vector<32x128xf32>
    %5 = tpu.matmul %3, %4, %cst_6 {dimension_numbers = #tpu.dot_dimension_numbers<[1], [0], [0], [1], [0, 0, 1, 1], [], []>} : vector<32x64xf32>, vector<64x128xf32>, vector<32x128xf32> -> vector<32x128xf32>
    %c0_7 = arith.constant 0 : index
    %c0_8 = arith.constant 0 : index
    %c0_9 = arith.constant 0 : index
    %6 = vector.load %arg4[%c0_7, %c0_8, %c0_9] : memref<1x32x128xf32, #tpu.memory_space<vmem>>, vector<1x32x128xf32>
    %7 = vector.shape_cast %6 : vector<1x32x128xf32> to vector<32x128xf32>
    %8 = vector.shape_cast %5 : vector<32x128xf32> to vector<1x32x128xf32>
    tpu.vector_store %arg4[%c0_7, %c0_8, %c0_9], %8 {strides = array<i32>} : memref<1x32x128xf32, #tpu.memory_space<vmem>>, vector<1x32x128xf32>,
    return
  }
  func.func @transform_0(%arg0: i32) -> (i32, i32, i32) {
    %c0_i32 = arith.constant 0 : i32
    %c0_i32_0 = arith.constant 0 : i32
    %c0_i32_1 = arith.constant 0 : i32
    return %arg0, %c0_i32, %c0_i32_0 : i32, i32, i32
  }
  func.func @transform_1(%arg0: i32) -> (i32, i32) {
    %c0_i32 = arith.constant 0 : i32
    %c0_i32_0 = arith.constant 0 : i32
    %c0_i32_1 = arith.constant 0 : i32
    return %c0_i32, %c0_i32_0 : i32, i32
  }
  func.func @transform_2(%arg0: i32) -> (i32, i32) {
    %c0_i32 = arith.constant 0 : i32
    %c0_i32_0 = arith.constant 0 : i32
    %c0_i32_1 = arith.constant 0 : i32
    return %c0_i32, %c0_i32_0 : i32, i32
  }
  func.func @transform_3(%arg0: i32) -> (i32, i32, i32) {
    %c0_i32 = arith.constant 0 : i32
    %c0_i32_0 = arith.constant 0 : i32
    %c0_i32_1 = arith.constant 0 : i32
    return %arg0, %c0_i32, %c0_i32_0 : i32, i32, i32
  }
}

</mosaic_0001>

<bundles_post_ra>
// kernel: tpu_custom_call.1
= control target key start
LH: loop header
LB: loop body
LE: loop exit
PB: predicated region body
PF: predicated region fallthrough
CT: control target
= control target key end

     0   :  { %8 = vsyncpa [#allocation3], 0  ;;  %s910_s0 = inlined_call_operand.vmem [shape: f32[2,16,64], index: 0, kind: input, shape index: {}]   ;;  %s911_s1 = inlined_call_operand.vmem [shape: f32[32,16], index: 1, kind: input, shape index: {}]   ;;  %s912_s2 = inlined_call_operand.hbm [shape: f32[64,128], index: 2, kind: input, shape index: {}]   ;;  %s913_s3 = inlined_call_operand.hbm [shape: f32[2,32,128], index: 3, kind: output, shape index: {}]  }
   0x1   :  { %9 = vsyncpa [#allocation4], 0 }
   0x2   :  { %11 = vsyncpa [#allocation4 + $0x1], 0  ;;  %s756_s12 = smov 0   ;;  %s758_s13 = smov 0  }
   0x3   :  { %s760_s14 = smov 0   ;;  %s762_s15 = smov 0  }
   0x4 LB: > { %s777_s16 = sadd.s32 4294967295, %s728_s15   ;;  %s486_s17 = sadd.s32 4294967294, %s728_s15   ;;  %s728_s15 = sphi %s762_s15, %s929_s15   ;;  %s724_s14 = sphi %s760_s14, %s928_s14   ;;  %s720_s13 = sphi %s758_s13, %s927_s13   ;;  %s716_s12 = sphi %s756_s12, %s926_s12  }
   0x5   : > { %s781_s18 = sadd.s32 1, %s728_s15   ;;  %s92_s19 = sadd.s32 1, %s724_s14 }
   0x6   : > { %s89_s20 = ssub.s32 %s728_s15, %s781_s18  ;;  %p102_p0 = scmp.ne.s32.totalorder %s724_s14, %s720_s13 }
   0x7   : > { %p90_p1 = scmp.eq.s32.totalorder %s89_s20, 0  ;;  %p103_p2 = scmp.eq.s32.totalorder %s777_s16, 1 }
   0x8   : > { %p108_p3 = scmp.ne.s32.totalorder %s720_s13, %s716_s12  ;;  %p109_p4 = scmp.eq.s32.totalorder %s486_s17, 1 }
   0x9   : > { %s792_s21 = scalar_select %p90_p1, %s724_s14, %s92_s19  }
   0xa   : > { %p794_p5 = por %p103_p2, %p102_p0  ;;  %p798_p6 = por %p109_p4, %p108_p3 }
   0xb   : > { %p487_p7 = scmp.ge.s32.totalorder %s728_s15, 1  ;;  %p116_p8 = scmp.lt.s32.totalorder %s728_s15, 3 }
   0xc   : > { %s917_s22 = scalar_select %p794_p5, 1, 0 }
   0xd   : > { %s918_s23 = scalar_select %p798_p6, 1, 0 }
   0xe   : > { %p914_p9 = scmp.eq.s32.totalorder %s777_s16, 0  ;;  %p805_p10 = pnand %p487_p7, %p116_p8 }
   0xf   : > { %s730_s25 = smov [#allocation2]   ;;  %s634_s30 = scalar_lea.hbm %s912_s2, 1024 }
  0x10   : > { %s919_s24 = scalar_select %p805_p10, 1, 0 }
  0x11   : > { %s131_s26 = sshll.u32 %s730_s25, 4  ;;  %p586_p11 = pneg %p805_p10  ;;  %s132_s26 = int_to_ptr.vmem [resolvable:$true] %s131_s26 }
  0x12   : > { %p635_p13 = scmp.ne.s32.totalorder %s912_s2, %s634_s30  ;;  %p641_p3 = scmp.lt.u32.totalorder %s634_s30, %s912_s2 }
  0x13   : > { %p813_p12 = pnand %p914_p9, %p586_p11 }
  0x15   : > { %p636_p0 = pneg %p813_p12 }
  0x17   : > { %p637_p1 = pnand %p636_p0, %p635_p13 }
  0x19   : > { %p638_p2 = pneg %p637_p1 }
  0x1b   : > { %p643_p4 = pnand %p641_p3, %p638_p2 }
  0x1d   : > { %646 = shalt.err (!%p643_p4)
}
  0x1e   : > { %s647_s8 = scalar_lea.vmem %s132_s26, 1024  ;;  %p655_p9 = scmp.lt.s32.totalorder %s132_s26, %s132_s26 }
  0x1f   : > { %p648_p7 = scmp.ne.s32.totalorder %s132_s26, %s647_s8  ;;  %p656_p6 = scmp.lt.s32.totalorder %s647_s8, %s647_s8 }
  0x21   : > { %p650_p8 = pnand %p648_p7, %p636_p0  ;;  %p657_p5 = por %p656_p6, %p655_p9 }
  0x23   : > { %p651_p11 = pneg %p650_p8 }
  0x25   : > { %p658_p10 = pnand %p657_p5, %p651_p11 }
  0x27   : > { %661 = shalt.err (!%p658_p10)
}
  0x28   : > { %s731_s9 = smov 128   ;;  %s732_s10 = smov 8  }
  0x29   : > { %589 = dma.hbm_to_vmem [thread:$0]  (!%p813_p12), %s912_s2, 1024, %s132_s26, [#allocation3], %s731_s9, %s731_s9, %s732_s10  }
  0x2a   : > { %p921_p13 = scmp.ne.s32.totalorder %s919_s24, 0 }
  0x2b   : > { %p922_p1 = scmp.eq.s32.totalorder (!%p921_p13), %s777_s16, 0 }
  0x2c   : > { %155 = sbr.rel (%p921_p13) target bundleno = 511 (0x1ff), region = 32 }
  0x33   : > { %707 = dma.done.wait (%p922_p1), [#allocation3], 1024   ;;  %p923_p0 = pmov %p922_p1 }
  0x34   : > { %p179_p5 = scmp.lt.s32.totalorder %s777_s16, 1  ;;  %vm190_vm0 = vcmask 130048   ;;  %v186_v2 = vld [vmem:[%s911_s1] sm:$0xff]  ;;  %v289_v5 = vld [vmem:[#allocation2 + $0x8] sm:$0xff]  ;;  %v290_v6 = vld [vmem:[#allocation2 + $0x10] sm:$0xff]  ;;  %vm296_vm1 = vcmask 523264  }
  0x35   : > { %709 = vsyncadd (%p923_p0), [#allocation3], 4294966272  ;;  %532 = vmatprep.mubr.msk.f32.mxu0 %vm190_vm0, %v186_v2  ;;  %v288_v4 = vld [vmem:[#allocation2] sm:$0xff]  ;;  %v291_v8 = vld [vmem:[#allocation2 + $0x18] sm:$0xff]  ;;  %s176_s8 = sand.u32 1, %s720_s13   ;;  %s509_s17 = sshll.u32 %s777_s16, 9 }
  0x36   : > { %s180_s19 = scalar_select %p179_p5, %s777_s16, 1  ;;  %v564_v7 = vpack.c.bf16 %v289_v5, %v288_v4  ;;  %v187_v9 = vld [vmem:[%s911_s1 + $0x8] sm:$0xff]  ;;  %v568_v10 = vpack.c.bf16 %v291_v8, %v290_v6  ;;  %v292_v11 = vld [vmem:[#allocation2 + $0x20] sm:$0xff]  ;;  %v188_v13 = vld [vmem:[%s911_s1 + $0x10] sm:$0xff] }
  0x37   : > { %v293_v12 = vld [vmem:[#allocation2 + $0x28] sm:$0xff]  ;;  %v189_v15 = vld [vmem:[%s911_s1 + $0x18] sm:$0xff]  ;;  %v294_v16 = vld [vmem:[#allocation2 + $0x30] sm:$0xff]  ;;  %s492_s9 = sshll.u32 %s176_s8, 5  ;;  %s867_s25 = scalar_lea.hbm %s913_s3, %s509_s17 }
  0x38   : > { %s508_s20 = sshll.u32 %s180_s19, 4  ;;  %565 = vmatprep.subr.bf16.mxu1 %v564_v7  ;;  %v572_v14 = vpack.c.bf16 %v293_v12, %v292_v11  ;;  %v295_v17 = vld [vmem:[#allocation2 + $0x38] sm:$0xff]  ;;  %s178_s10 = scalar_lea.vmem [#allocation5], %s492_s9 }
  0x39   : > { %s183_s28 = scalar_lea.vmem %s910_s0, %s508_s20  ;;  %567 = vmatpush3.bf16.msra.mxu1 %v564_v7  ;;  %v576_v18 = vpack.c.bf16 %v295_v17, %v294_v16  ;;  %s412_s11 = sshll.u32 %s178_s10, 4  ;;  %s862_s11 = int_to_ptr.vmem [resolvable:$true] %s412_s11 }
  0x3a   : > { %v184_v0 = vld [vmem:[%s183_s28] sm:$0xff]  ;;  %v185_v1 = vld [vmem:[%s183_s28 + $0x8] sm:$0xff]  ;;  %569 = vmatprep.subr.bf16.mxu1 %v568_v10  ;;  %s869_s27 = scalar_lea.sflag [#allocation4], %s176_s8  ;;  %s662_s16 = scalar_lea.vmem %s862_s11, 512 }
  0x3b   : > { %v560_v3 = vpack.c.bf16 %v185_v1, %v184_v0  ;;  %p663_p6 = scmp.ne.s32.totalorder %s862_s11, %s662_s16  ;;  %p924_p9 = scmp.ne.s32.totalorder %s917_s22, 0 }
  0x3c   : > { %s733_s28 = smov [#allocation5]  }
  0x3d   : > { %561 = vmatprep.subr.bf16.mxu0 %v560_v3  ;;  %571 = vmatpush3.bf16.msra.mxu1 %v568_v10  ;;  %p664_p10 = pnand %p663_p6, %p924_p9  ;;  %s666_s24 = sshll.u32 %s733_s28, 4  ;;  %s667_s24 = int_to_ptr.vmem [resolvable:$false] %s666_s24 }
  0x3e   : > { %563 = vmatpush3.bf16.msra.mxu0 %v560_v3  ;;  %573 = vmatprep.subr.bf16.mxu1 %v572_v14  ;;  %s668_s26 = scalar_lea.vmem %s667_s24, 1024  ;;  %p669_p2 = scmp.lt.s32.totalorder %s862_s11, %s667_s24 }
  0x3f   : > { %p665_p12 = pneg %p664_p10  ;;  %p670_p3 = scmp.lt.s32.totalorder %s668_s26, %s662_s16 }
  0x41   : > { %533 = vmatmul.mubr.msk.f32.vlgmr.msra.gmra.mrb[0].mxu0 %vm190_vm0, %v187_v9  ;;  %575 = vmatpush3.bf16.msra.mxu1 %v572_v14  ;;  %p671_p4 = por %p670_p3, %p669_p2 }
  0x42   : > { %535 = vmatprep.mubr.msk.f32.mxu0 %vm190_vm0, %v188_v13  ;;  %577 = vmatprep.subr.bf16.mxu1 %v576_v18 }
  0x43   : > { %p672_p7 = pnand %p671_p4, %p665_p12 }
  0x45   : > { %536 = vmatmul.mubr.msk.f32.gmra.mrb[2].mxu0 %vm190_vm0, %v189_v15  ;;  %579 = vmatpush3.bf16.msra.mxu1 %v576_v18 }
 0x114   : > { %v534_v19 = vpop.f32.mrb[0].mxu0 }
 0x115   : > { %v269_v20 = vpop.f32.mrb[1].mxu0 }
 0x116   : > { %554 = vmatprep.mubr.msk.f32.mxu1 %vm296_vm1, %v269_v20 }
 0x117   : > { %555 = vmatmul.mubr.msk.f32.vlgmr.msra.gmra.mrb[0].mxu1 %vm296_vm1, %v534_v19 }
 0x118   : > { %v537_v21 = vpop.f32.mrb[2].mxu0 }
 0x119   : > { %v279_v22 = vpop.f32.mrb[3].mxu0 }
 0x11a   : > { %557 = vmatprep.mubr.msk.f32.mxu1 %vm296_vm1, %v279_v22 }
 0x11b   : > { %558 = vmatmul.mubr.msk.f32.gmra.mrb[2].mxu1 %vm296_vm1, %v537_v21 }
 0x1ea   : > { %v556_v23 = vpop.f32.mrb[0].mxu1 }
 0x1eb   : > { %395 = vst [vmem:[%s178_s10 + $0x8] sm:$0xff] %v556_v23  ;;  %v375_v24 = vpop.f32.mrb[1].mxu1 }
 0x1ec   : > { %394 = vst [vmem:[%s178_s10] sm:$0xff] %v375_v24 }
 0x1ee   : > { %v559_v25 = vpop.f32.mrb[2].mxu1 }
 0x1ef   : > { %397 = vst [vmem:[%s178_s10 + $0x18] sm:$0xff] %v559_v25  ;;  %v385_v26 = vpop.f32.mrb[3].mxu1 }
 0x1f0   : > { %396 = vst [vmem:[%s178_s10 + $0x10] sm:$0xff] %v385_v26 }
 0x1f1   : > { %675 = shalt.err (!%p672_p7)
}
 0x1f2   : > { %s676_s29 = scalar_lea.hbm %s867_s25, 512  ;;  %s680_s5 = scalar_lea.hbm %s913_s3, 1024 }
 0x1f3   : > { %p677_p8 = scmp.ne.s32.totalorder %s867_s25, %s676_s29  ;;  %p681_p1 = scmp.lt.u32.totalorder %s867_s25, %s913_s3 }
 0x1f4   : > { %p682_p0 = scmp.lt.u32.totalorder %s680_s5, %s676_s29  ;;  %p684_p6 = scmp.lt.u32.totalorder %s676_s29, %s867_s25 }
 0x1f5   : > { %p678_p11 = pnand %p677_p8, %p924_p9 }
 0x1f6   : > { %p683_p5 = por %p682_p0, %p681_p1 }
 0x1f7   : > { %p679_p13 = pneg %p678_p11 }
 0x1f8   : > { %p685_p10 = por %p684_p6, %p683_p5 }
 0x1fa   : > { %p686_p12 = pnand %p685_p10, %p679_p13 }
 0x1fc   : > { %689 = shalt.err (!%p686_p12)
}
 0x1fd   : > { %s734_s8 = smov 128   ;;  %s735_s9 = smov 8  }
 0x1fe   : > { %584 = dma.vmem_to_hbm [thread:$0]  (%p924_p9), %s862_s11, 512, %s867_s25, %s869_s27, %s734_s8, %s734_s8, %s735_s9  }
 0x1ff PF: > { %p596_p2 = scmp.ge.s32.totalorder %s728_s15, 2  ;;  %s427_s10 = sand.u32 1, %s716_s12  }
 0x200   : > { %p925_p3 = scmp.ne.s32.totalorder %s918_s23, 0  ;;  %s428_s17 = scalar_lea.sflag [#allocation4], %s427_s10 }
 0x202   : > { %p591_p4 = pnand %p596_p2, %p925_p3 }
 0x204   : > { %711 = dma.done.wait (!%p591_p4), %s428_s17, 512  }
 0x205   : > { %713 = vsyncadd (!%p591_p4), %s428_s17, 4294966784  ;;  %p14_p7 = scmp.ge.s32.totalorder %s781_s18, 4   ;;  %s926_s12 = smov %s720_s13 }
 0x206   : > { %s927_s13 = smov %s724_s14  ;;  %s928_s14 = smov %s792_s21 }
 0x207   : > { %s929_s15 = smov %s781_s18  ;;  %16 = sbr.rel (!%p14_p7) target bundleno = 4 (0x4), region = 72 }
 0x20e   :  { %433 = vsyncpa [#allocation3], 1 }
 0x20f   :  { %435 = vsyncpa [#allocation3 + $0x1], 1 }
 0x210   :  { %436 = vsyncpa [#allocation4], 1 }
 0x211   :  { %438 = vsyncpa [#allocation4 + $0x1], 1 }

</bundles_post_ra>
